<compile_context>
chip_gen: v7x
topology: tpu7x:2x2x1
jax: 0.10.0
libtpu: 0.0.40
codegen_flags: <defaults>
</compile_context>

<pallas_src>
import numpy as np

import jax
import jax.numpy as jnp
from jax import lax
from jax.experimental import pallas as pl
from jax.experimental.pallas import tpu as pltpu

PAD = 5                   # shared H halo (max dilation)
DILATIONS = (1, 2, 5)


def _round_up(x, m):
    return (x + m - 1) // m * m


def _double_conv_kernel(x_ref, wbs_ref, bcs_ref, w4_ref, b4_ref, o_ref):
    # x_ref  : (NB, Hp, Kp)        bf16  H-padded input, lane-dense (w, cin)+pad
    # wbs_ref: (3, 3*Kp, W*Cout)   bf16  per-branch banded conv weights (ky-merged)
    # bcs_ref: (3, 1, W*Cout)      f32   BN-folded conv biases, tiled over W
    # w4_ref : (3*W*Cout, W*Cout)  bf16  stacked block-diagonal 1x1-conv weights
    # b4_ref : (1, W*Cout)         f32
    # o_ref  : (NB, H, W*Cout)     f32   lane-dense output
    NB, Hp, Kp = x_ref.shape
    H = o_ref.shape[1]
    WCo = o_ref.shape[2]
    M = NB * H

    x = x_ref[...]                                    # (NB, Hp, Kp) bf16, loaded once

    branch_outs = []
    for i, d in enumerate(DILATIONS):                 # static Python unroll
        r0 = PAD - d
        # Merge the 3 ky taps into one matmul: lane-concat the 3 row slices
        # (each segment is a full 128-lane multiple) -> single (M, 3*Kp) LHS.
        lhs = jnp.concatenate(
            [x[:, r0 + ky * d: r0 + ky * d + H, :] for ky in range(3)],
            axis=-1).reshape(M, 3 * Kp)
        acc = bcs_ref[i] + jnp.dot(lhs, wbs_ref[i],
                                   preferred_element_type=jnp.float32)
        branch_outs.append(jnp.maximum(acc, 0.0).astype(jnp.bfloat16))

    # conv4 as a single matmul over the lane-concatenated branch outputs.
    y = jnp.concatenate(branch_outs, axis=-1)         # (M, 3*WCo) bf16
    out = b4_ref[...] + jnp.dot(y, w4_ref[...],
                                preferred_element_type=jnp.float32)
    o_ref[...] = out.reshape(NB, H, WCo)              # full-lane f32 store


def prepare_params(params, W, Cin, Cout):
    """Host-side packing of BN-folded params into MXU-friendly slabs."""
    (w1, b1), (w2, b2), (w3, b3), (w4, b4) = params
    Kc = W * Cin
    Kp = _round_up(Kc, 128)                           # lane-aligned K segment
    WCo = W * Cout

    conv_ws = [np.asarray(w1), np.asarray(w2), np.asarray(w3)]   # (3,3,Cin,Cout) HWIO
    wbs = np.zeros((3, 3 * Kp, WCo), np.float32)
    for bi, d in enumerate(DILATIONS):
        for ky in range(3):
            for kx in range(3):
                for w in range(W):
                    c = w + (kx - 1) * d              # input column of this tap
                    if 0 <= c < W:                    # width padding folded away
                        wbs[bi,
                            ky * Kp + c * Cin: ky * Kp + (c + 1) * Cin,
                            w * Cout:(w + 1) * Cout] = conv_ws[bi][ky, kx]

    bcs = np.stack([np.tile(np.asarray(b), W)[None, :] for b in (b1, b2, b3)])
    w4np = np.asarray(w4)                             # (3*Cout, Cout)
    eye = np.eye(W, dtype=np.float32)
    # Stacked block-diagonal conv4 weight matching the lane-concat [y1|y2|y3].
    w4full = np.concatenate(
        [np.kron(eye, w4np[i * Cout:(i + 1) * Cout, :]) for i in range(3)],
        axis=0)                                       # (3*WCo, WCo)
    b4t = np.tile(np.asarray(b4), W)[None, :]         # (1, WCo)

    return (jnp.asarray(wbs, dtype=jnp.bfloat16),
            jnp.asarray(bcs, dtype=jnp.float32),
            jnp.asarray(w4full, dtype=jnp.bfloat16),
            jnp.asarray(b4t, dtype=jnp.float32))


def double_conv_1(x_nhwc, prepared, out_channels):
    """x_nhwc: (N, H, W, Cin) float32. Returns (N, H, W, Cout)."""
    N, H, W, Cin = x_nhwc.shape
    Cout = out_channels
    Hp = H + 2 * PAD
    Kc = W * Cin
    Kp = _round_up(Kc, 128)
    WCo = W * Cout
    wbs, bcs, w4full, b4 = prepared

    # Batch blocking: NB images per grid step.  Target M = NB*H ~ 256 rows, but
    # keep >=2 grid steps when N >= 2 so a v7x megacore can split the batch.
    NB = max(1, min(max(1, N // 2), max(1, 256 // H)))
    while N % NB:                                     # make NB a divisor of N
        NB -= 1
    n_blocks = N // NB

    # Pad along H only (width padding lives in the slab), flatten (w, cin) onto
    # the lane axis, zero-pad lanes to Kp and cast to bf16 once (halves the
    # streamed input; no in-kernel cast passes).
    x2d = jnp.pad(x_nhwc, ((0, 0), (PAD, PAD), (0, 0), (0, 0))
                  ).reshape(N, Hp, Kc)
    if Kp != Kc:
        x2d = jnp.pad(x2d, ((0, 0), (0, 0), (0, Kp - Kc)))
    x2d = x2d.astype(jnp.bfloat16)

    flops = N * (3 * 2 * H * (3 * Kp) * WCo + 2 * H * (3 * WCo) * WCo)
    bytes_accessed = (x2d.size * 2 + wbs.size * 2 + w4full.size * 2
                      + bcs.size * 4 + b4.size * 4 + N * H * WCo * 4)

    # VMEM budget from actual buffer sizes (double-buffered pipeline) + slack.
    vmem_bytes = (2 * (NB * Hp * Kp * 2 + NB * H * WCo * 4)
                  + 2 * (wbs.size * 2 + bcs.size * 4
                         + w4full.size * 2 + b4.size * 4)
                  + (2 << 20))
    vmem_limit = int(min(96 * 2**20, max(vmem_bytes, 16 * 2**20)))

    grid_spec = pltpu.PrefetchScalarGridSpec(
        num_scalar_prefetch=0,
        grid=(n_blocks,),
        in_specs=[
            pl.BlockSpec((NB, Hp, Kp), lambda b: (b, 0, 0)),
            pl.BlockSpec(wbs.shape, lambda b: (0, 0, 0)),
            pl.BlockSpec(bcs.shape, lambda b: (0, 0, 0)),
            pl.BlockSpec(w4full.shape, lambda b: (0, 0)),
            pl.BlockSpec(b4.shape, lambda b: (0, 0)),
        ],
        out_specs=pl.BlockSpec((NB, H, WCo), lambda b: (b, 0, 0)),
    )

    out2d = pl.pallas_call(
        _double_conv_kernel,
        out_shape=jax.ShapeDtypeStruct((N, H, WCo), jnp.float32),
        grid_spec=grid_spec,
        compiler_params=pltpu.CompilerParams(
            dimension_semantics=("parallel",),
            vmem_limit_bytes=vmem_limit),
        cost_estimate=pl.CostEstimate(flops=flops, transcendentals=0,
                                      bytes_accessed=bytes_accessed),
    )(x2d, wbs, bcs, w4full, b4)

    return out2d.reshape(N, H, W, Cout)


def make_params(key, in_channels, out_channels):
    """Deterministic synthetic parameters. BatchNorm (eval mode) is folded
    into per-output-channel scale/shift on the conv weight & bias."""
    ks = jax.random.split(key, 16)
    eps = 1e-5

    def conv_bn(kw, kb, kg, kbeta, kmean, kvar):
        w = jax.random.normal(kw, (3, 3, in_channels, out_channels),
                              jnp.float32) * 0.1
        b = jax.random.normal(kb, (out_channels,), jnp.float32) * 0.1
        gamma = 1.0 + 0.1 * jax.random.normal(kg, (out_channels,), jnp.float32)
        beta = 0.1 * jax.random.normal(kbeta, (out_channels,), jnp.float32)
        mean = 0.1 * jax.random.normal(kmean, (out_channels,), jnp.float32)
        var = jnp.abs(1.0 + 0.1 * jax.random.normal(kvar, (out_channels,),
                                                    jnp.float32))
        scale = gamma / jnp.sqrt(var + eps)
        w_f = w * scale[None, None, None, :]
        b_f = (b - mean) * scale + beta
        return w_f, b_f

    p1 = conv_bn(*ks[0:6])
    p2 = conv_bn(*ks[6:12])
    p3 = conv_bn(*[ks[12], ks[13], ks[14], ks[15],
                   jax.random.fold_in(key, 100), jax.random.fold_in(key, 101)])
    w4 = jax.random.normal(jax.random.fold_in(key, 200),
                           (3 * out_channels, out_channels), jnp.float32) * 0.1
    b4 = jax.random.normal(jax.random.fold_in(key, 201),
                           (out_channels,), jnp.float32) * 0.1
    return p1, p2, p3, (w4, b4)


def reference_forward(x_nhwc, params):
    """Pure-JAX reference using lax.conv_general_dilated (same folded params)."""
    (w1, b1), (w2, b2), (w3, b3), (w4, b4) = params

    def conv_relu(x, w, b, d):
        y = lax.conv_general_dilated(
            x, w, window_strides=(1, 1), padding=[(d, d), (d, d)],
            rhs_dilation=(d, d),
            dimension_numbers=("NHWC", "HWIO", "NHWC"))
        return jnp.maximum(y + b[None, None, None, :], 0.0)

    y = jnp.concatenate([conv_relu(x_nhwc, w1, b1, 1),
                         conv_relu(x_nhwc, w2, b2, 2),
                         conv_relu(x_nhwc, w3, b3, 5)], axis=-1)
    return jnp.einsum("nhwc,co->nhwo", y, w4) + b4[None, None, None, :]


if __name__ == "__main__":
    key = jax.random.PRNGKey(0)
    N, Cin, Cout, H, W = 2, 4, 8, 16, 16

    kx, kp = jax.random.split(key)
    x_nchw = jax.random.normal(kx, (N, Cin, H, W), jnp.float32)  # PyTorch layout
    x_nhwc = jnp.transpose(x_nchw, (0, 2, 3, 1))                 # kernel layout
    params = make_params(kp, Cin, Cout)
    prepared = prepare_params(params, W, Cin, Cout)

    out = jax.block_until_ready(double_conv_1(x_nhwc, prepared, Cout))
    ref = jax.block_until_ready(reference_forward(x_nhwc, params))

    assert out.shape == (N, H, W, Cout)
    # bf16 matmul operands (f32 accumulation) -> small drift vs the f32 reference.
    max_err = float(jnp.max(jnp.abs(out - ref)))
    assert jnp.allclose(out, ref, atol=2e-2, rtol=2e-2), (
        "mismatch vs reference, max abs err = %f" % max_err)

    print("KERNEL_OK")
</pallas_src>

<mosaic_0001>
module attributes {stable_mosaic.version = 11 : i64} {
  func.func @_double_conv_kernel(%arg0: i32, %arg1: memref<1x26x128xbf16, #tpu.memory_space<vmem>>, %arg2: memref<3x384x128xbf16, #tpu.memory_space<vmem>>, %arg3: memref<3x1x128xf32, #tpu.memory_space<vmem>>, %arg4: memref<384x128xbf16, #tpu.memory_space<vmem>>, %arg5: memref<1x128xf32, #tpu.memory_space<vmem>>, %arg6: memref<1x16x128xf32, #tpu.memory_space<vmem>>) attributes {dimension_semantics = [#tpu.dimension_semantics<parallel>], iteration_bounds = array<i64: 2>, scalar_prefetch = 0 : i64, scratch_operands = 0 : i64, tpu.core_type = #tpu.core_type<tc>, window_params = [{transform_indices = @transform_0, window_bounds = array<i64: 1, 26, 128>}, {pipeline_mode = #tpu.pipeline_mode<synchronous>, transform_indices = @transform_1, window_bounds = array<i64: 3, 384, 128>}, {pipeline_mode = #tpu.pipeline_mode<synchronous>, transform_indices = @transform_2, window_bounds = array<i64: 3, 1, 128>}, {pipeline_mode = #tpu.pipeline_mode<synchronous>, transform_indices = @transform_3, window_bounds = array<i64: 384, 128>}, {pipeline_mode = #tpu.pipeline_mode<synchronous>, transform_indices = @transform_4, window_bounds = array<i64: 1, 128>}, {transform_indices = @transform_5, window_bounds = array<i64: 1, 16, 128>}]} {
    %c0 = arith.constant 0 : index
    %c0_0 = arith.constant 0 : index
    %c0_1 = arith.constant 0 : index
    %0 = vector.load %arg1[%c0, %c0_0, %c0_1] : memref<1x26x128xbf16, #tpu.memory_space<vmem>>, vector<1x26x128xbf16>
    %1 = vector.extract_strided_slice %0 {offsets = [0, 4, 0], sizes = [1, 16, 128], strides = [1, 1, 1]} : vector<1x26x128xbf16> to vector<1x16x128xbf16>
    %2 = vector.extract_strided_slice %0 {offsets = [0, 5, 0], sizes = [1, 16, 128], strides = [1, 1, 1]} : vector<1x26x128xbf16> to vector<1x16x128xbf16>
    %3 = vector.extract_strided_slice %0 {offsets = [0, 6, 0], sizes = [1, 16, 128], strides = [1, 1, 1]} : vector<1x26x128xbf16> to vector<1x16x128xbf16>
    %4 = tpu.concatenate %1, %2, %3 in 2 : vector<1x16x128xbf16>, vector<1x16x128xbf16>, vector<1x16x128xbf16> -> vector<1x16x384xbf16>
    %5 = vector.shape_cast %4 : vector<1x16x384xbf16> to vector<16x384xbf16>
    %c0_2 = arith.constant 0 : index
    %c0_3 = arith.constant 0 : index
    %c0_4 = arith.constant 0 : index
    %6 = vector.load %arg3[%c0_2, %c0_3, %c0_4] : memref<3x1x128xf32, #tpu.memory_space<vmem>>, vector<1x1x128xf32>
    %7 = vector.shape_cast %6 : vector<1x1x128xf32> to vector<1x128xf32>
    %c0_5 = arith.constant 0 : index
    %c0_6 = arith.constant 0 : index
    %c0_7 = arith.constant 0 : index
    %8 = vector.load %arg2[%c0_5, %c0_6, %c0_7] : memref<3x384x128xbf16, #tpu.memory_space<vmem>>, vector<1x384x128xbf16>
    %9 = vector.shape_cast %8 : vector<1x384x128xbf16> to vector<384x128xbf16>
    %cst = arith.constant dense<0.000000e+00> : vector<16x128xf32>
    %10 = tpu.matmul %5, %9, %cst {dimension_numbers = #tpu.dot_dimension_numbers<[1], [0], [0], [1], [0, 0, 1, 1], [], []>} : vector<16x384xbf16>, vector<384x128xbf16>, vector<16x128xf32> -> vector<16x128xf32>
    %11 = vector.broadcast %7 : vector<1x128xf32> to vector<16x128xf32>
    %12 = arith.addf %11, %10 : vector<16x128xf32>
    %cst_8 = arith.constant 0.000000e+00 : f32
    %13 = vector.broadcast %cst_8 : f32 to vector<16x128xf32>
    %14 = arith.maximumf %12, %13 : vector<16x128xf32>
    %15 = arith.truncf %14 : vector<16x128xf32> to vector<16x128xbf16>
    %16 = vector.extract_strided_slice %0 {offsets = [0, 3, 0], sizes = [1, 16, 128], strides = [1, 1, 1]} : vector<1x26x128xbf16> to vector<1x16x128xbf16>
    %17 = vector.extract_strided_slice %0 {offsets = [0, 5, 0], sizes = [1, 16, 128], strides = [1, 1, 1]} : vector<1x26x128xbf16> to vector<1x16x128xbf16>
    %18 = vector.extract_strided_slice %0 {offsets = [0, 7, 0], sizes = [1, 16, 128], strides = [1, 1, 1]} : vector<1x26x128xbf16> to vector<1x16x128xbf16>
    %19 = tpu.concatenate %16, %17, %18 in 2 : vector<1x16x128xbf16>, vector<1x16x128xbf16>, vector<1x16x128xbf16> -> vector<1x16x384xbf16>
    %20 = vector.shape_cast %19 : vector<1x16x384xbf16> to vector<16x384xbf16>
    %c1 = arith.constant 1 : index
    %c0_9 = arith.constant 0 : index
    %c0_10 = arith.constant 0 : index
    %21 = vector.load %arg3[%c1, %c0_9, %c0_10] : memref<3x1x128xf32, #tpu.memory_space<vmem>>, vector<1x1x128xf32>
    %22 = vector.shape_cast %21 : vector<1x1x128xf32> to vector<1x128xf32>
    %c1_11 = arith.constant 1 : index
    %c0_12 = arith.constant 0 : index
    %c0_13 = arith.constant 0 : index
    %23 = vector.load %arg2[%c1_11, %c0_12, %c0_13] : memref<3x384x128xbf16, #tpu.memory_space<vmem>>, vector<1x384x128xbf16>
    %24 = vector.shape_cast %23 : vector<1x384x128xbf16> to vector<384x128xbf16>
    %cst_14 = arith.constant dense<0.000000e+00> : vector<16x128xf32>
    %25 = tpu.matmul %20, %24, %cst_14 {dimension_numbers = #tpu.dot_dimension_numbers<[1], [0], [0], [1], [0, 0, 1, 1], [], []>} : vector<16x384xbf16>, vector<384x128xbf16>, vector<16x128xf32> -> vector<16x128xf32>
    %26 = vector.broadcast %22 : vector<1x128xf32> to vector<16x128xf32>
    %27 = arith.addf %26, %25 : vector<16x128xf32>
    %cst_15 = arith.constant 0.000000e+00 : f32
    %28 = vector.broadcast %cst_15 : f32 to vector<16x128xf32>
    %29 = arith.maximumf %27, %28 : vector<16x128xf32>
    %30 = arith.truncf %29 : vector<16x128xf32> to vector<16x128xbf16>
    %31 = vector.extract_strided_slice %0 {offsets = [0, 0, 0], sizes = [1, 16, 128], strides = [1, 1, 1]} : vector<1x26x128xbf16> to vector<1x16x128xbf16>
    %32 = vector.extract_strided_slice %0 {offsets = [0, 5, 0], sizes = [1, 16, 128], strides = [1, 1, 1]} : vector<1x26x128xbf16> to vector<1x16x128xbf16>
    %33 = vector.extract_strided_slice %0 {offsets = [0, 10, 0], sizes = [1, 16, 128], strides = [1, 1, 1]} : vector<1x26x128xbf16> to vector<1x16x128xbf16>
    %34 = tpu.concatenate %31, %32, %33 in 2 : vector<1x16x128xbf16>, vector<1x16x128xbf16>, vector<1x16x128xbf16> -> vector<1x16x384xbf16>
    %35 = vector.shape_cast %34 : vector<1x16x384xbf16> to vector<16x384xbf16>
    %c2 = arith.constant 2 : index
    %c0_16 = arith.constant 0 : index
    %c0_17 = arith.constant 0 : index
    %36 = vector.load %arg3[%c2, %c0_16, %c0_17] : memref<3x1x128xf32, #tpu.memory_space<vmem>>, vector<1x1x128xf32>
    %37 = vector.shape_cast %36 : vector<1x1x128xf32> to vector<1x128xf32>
    %c2_18 = arith.constant 2 : index
    %c0_19 = arith.constant 0 : index
    %c0_20 = arith.constant 0 : index
    %38 = vector.load %arg2[%c2_18, %c0_19, %c0_20] : memref<3x384x128xbf16, #tpu.memory_space<vmem>>, vector<1x384x128xbf16>
    %39 = vector.shape_cast %38 : vector<1x384x128xbf16> to vector<384x128xbf16>
    %cst_21 = arith.constant dense<0.000000e+00> : vector<16x128xf32>
    %40 = tpu.matmul %35, %39, %cst_21 {dimension_numbers = #tpu.dot_dimension_numbers<[1], [0], [0], [1], [0, 0, 1, 1], [], []>} : vector<16x384xbf16>, vector<384x128xbf16>, vector<16x128xf32> -> vector<16x128xf32>
    %41 = vector.broadcast %37 : vector<1x128xf32> to vector<16x128xf32>
    %42 = arith.addf %41, %40 : vector<16x128xf32>
    %cst_22 = arith.constant 0.000000e+00 : f32
    %43 = vector.broadcast %cst_22 : f32 to vector<16x128xf32>
    %44 = arith.maximumf %42, %43 : vector<16x128xf32>
    %45 = arith.truncf %44 : vector<16x128xf32> to vector<16x128xbf16>
    %46 = tpu.concatenate %15, %30, %45 in 1 : vector<16x128xbf16>, vector<16x128xbf16>, vector<16x128xbf16> -> vector<16x384xbf16>
    %c0_23 = arith.constant 0 : index
    %c0_24 = arith.constant 0 : index
    %47 = vector.load %arg5[%c0_23, %c0_24] : memref<1x128xf32, #tpu.memory_space<vmem>>, vector<1x128xf32>
    %c0_25 = arith.constant 0 : index
    %c0_26 = arith.constant 0 : index
    %48 = vector.load %arg4[%c0_25, %c0_26] : memref<384x128xbf16, #tpu.memory_space<vmem>>, vector<384x128xbf16>
    %cst_27 = arith.constant dense<0.000000e+00> : vector<16x128xf32>
    %49 = tpu.matmul %46, %48, %cst_27 {dimension_numbers = #tpu.dot_dimension_numbers<[1], [0], [0], [1], [0, 0, 1, 1], [], []>} : vector<16x384xbf16>, vector<384x128xbf16>, vector<16x128xf32> -> vector<16x128xf32>
    %50 = vector.broadcast %47 : vector<1x128xf32> to vector<16x128xf32>
    %51 = arith.addf %50, %49 : vector<16x128xf32>
    %52 = vector.shape_cast %51 : vector<16x128xf32> to vector<1x16x128xf32>
    %c0_28 = arith.constant 0 : index
    %c0_29 = arith.constant 0 : index
    %c0_30 = arith.constant 0 : index
    %53 = vector.load %arg6[%c0_28, %c0_29, %c0_30] : memref<1x16x128xf32, #tpu.memory_space<vmem>>, vector<1x16x128xf32>
    tpu.vector_store %arg6[%c0_28, %c0_29, %c0_30], %52 {strides = array<i32>} : memref<1x16x128xf32, #tpu.memory_space<vmem>>, vector<1x16x128xf32>,
    return
  }
  func.func @transform_0(%arg0: i32) -> (i32, i32, i32) {
    %c0_i32 = arith.constant 0 : i32
    %c0_i32_0 = arith.constant 0 : i32
    %c0_i32_1 = arith.constant 0 : i32
    return %arg0, %c0_i32, %c0_i32_0 : i32, i32, i32
  }
  func.func @transform_1(%arg0: i32) -> (i32, i32, i32) {
    %c0_i32 = arith.constant 0 : i32
    %c0_i32_0 = arith.constant 0 : i32
    %c0_i32_1 = arith.constant 0 : i32
    %c0_i32_2 = arith.constant 0 : i32
    return %c0_i32, %c0_i32_0, %c0_i32_1 : i32, i32, i32
  }
  func.func @transform_2(%arg0: i32) -> (i32, i32, i32) {
    %c0_i32 = arith.constant 0 : i32
    %c0_i32_0 = arith.constant 0 : i32
    %c0_i32_1 = arith.constant 0 : i32
    %c0_i32_2 = arith.constant 0 : i32
    return %c0_i32, %c0_i32_0, %c0_i32_1 : i32, i32, i32
  }
  func.func @transform_3(%arg0: i32) -> (i32, i32) {
    %c0_i32 = arith.constant 0 : i32
    %c0_i32_0 = arith.constant 0 : i32
    %c0_i32_1 = arith.constant 0 : i32
    return %c0_i32, %c0_i32_0 : i32, i32
  }
  func.func @transform_4(%arg0: i32) -> (i32, i32) {
    %c0_i32 = arith.constant 0 : i32
    %c0_i32_0 = arith.constant 0 : i32
    %c0_i32_1 = arith.constant 0 : i32
    return %c0_i32, %c0_i32_0 : i32, i32
  }
  func.func @transform_5(%arg0: i32) -> (i32, i32, i32) {
    %c0_i32 = arith.constant 0 : i32
    %c0_i32_0 = arith.constant 0 : i32
    %c0_i32_1 = arith.constant 0 : i32
    return %arg0, %c0_i32, %c0_i32_0 : i32, i32, i32
  }
}

</mosaic_0001>

<bundles_post_ra>
// kernel: tpu_custom_call.1
= control target key start
LH: loop header
LB: loop body
LE: loop exit
PB: predicated region body
PF: predicated region fallthrough
CT: control target
= control target key end

     0   :  { %10 = vsyncpa [#allocation3], 0  ;;  %s2553_s0 = inlined_call_operand.vmem [shape: bf16[2,26,128], index: 0, kind: input, shape index: {}]   ;;  %s2554_s1 = inlined_call_operand.hbm [shape: bf16[3,384,128], index: 1, kind: input, shape index: {}]   ;;  %s2555_s2 = inlined_call_operand.vmem [shape: f32[3,1,128], index: 2, kind: input, shape index: {}]   ;;  %s2556_s3 = inlined_call_operand.hbm [shape: bf16[384,128], index: 3, kind: input, shape index: {}]   ;;  %s2557_s4 = inlined_call_operand.vmem [shape: f32[1,128], index: 4, kind: input, shape index: {}]   ;;  %s2558_s5 = inlined_call_operand.hbm [shape: f32[2,16,128], index: 5, kind: output, shape index: {}]  }
   0x1   :  { %11 = vsyncpa [#allocation6], 0 }
   0x2   :  { %12 = vsyncpa [#allocation4], 0 }
   0x3   :  { %14 = vsyncpa [#allocation4 + $0x1], 0  ;;  %s2268_s18 = smov 0   ;;  %s2270_s19 = smov 0  }
   0x4   :  { %s2272_s20 = smov 0   ;;  %s2274_s21 = smov 0  }
   0x5 LB: > { %s2289_s22 = sadd.s32 4294967295, %s2227_s21   ;;  %s1607_s23 = sadd.s32 4294967294, %s2227_s21   ;;  %s2227_s21 = sphi %s2274_s21, %s2576_s21   ;;  %s2223_s20 = sphi %s2272_s20, %s2575_s20   ;;  %s2219_s19 = sphi %s2270_s19, %s2574_s19   ;;  %s2215_s18 = sphi %s2268_s18, %s2573_s18  }
   0x6   : > { %s2293_s24 = sadd.s32 1, %s2227_s21   ;;  %s137_s25 = sadd.s32 1, %s2223_s20 }
   0x7   : > { %s134_s26 = ssub.s32 %s2227_s21, %s2293_s24  ;;  %p147_p0 = scmp.ne.s32.totalorder %s2223_s20, %s2219_s19 }
   0x8   : > { %p135_p1 = scmp.eq.s32.totalorder %s134_s26, 0  ;;  %p148_p2 = scmp.eq.s32.totalorder %s2289_s22, 1 }
   0x9   : > { %p153_p3 = scmp.ne.s32.totalorder %s2219_s19, %s2215_s18  ;;  %p154_p4 = scmp.eq.s32.totalorder %s1607_s23, 1 }
   0xa   : > { %s2304_s27 = scalar_select %p135_p1, %s2223_s20, %s137_s25  }
   0xb   : > { %p2306_p5 = por %p148_p2, %p147_p0  ;;  %p2310_p6 = por %p154_p4, %p153_p3 }
   0xc   : > { %p1608_p7 = scmp.ge.s32.totalorder %s2227_s21, 1  ;;  %p161_p8 = scmp.lt.s32.totalorder %s2227_s21, 3 }
   0xd   : > { %s2562_s28 = scalar_select %p2306_p5, 1, 0 }
   0xe   : > { %s2563_s29 = scalar_select %p2310_p6, 1, 0 }
   0xf   : > { %p2559_p9 = scmp.eq.s32.totalorder %s2289_s22, 0  ;;  %p2317_p10 = pnand %p1608_p7, %p161_p8 }
  0x10   : > { %s2229_s6 = smov [#allocation2]   ;;  %s2230_s9 = smov [#allocation5]  }
  0x11   : > { %s2564_s30 = scalar_select %p2317_p10, 1, 0 }
  0x12   : > { %s173_s7 = sshll.u32 %s2229_s6, 4  ;;  %p1945_p11 = pneg %p2317_p10  ;;  %s174_s7 = int_to_ptr.vmem [resolvable:$true] %s173_s7 }
  0x13   : > { %s189_s10 = sshll.u32 %s2230_s9, 4  ;;  %s2101_s13 = scalar_lea.hbm %s2554_s1, 9216  ;;  %s2329_s10 = int_to_ptr.vmem [resolvable:$true] %s189_s10 }
  0x14   : > { %p2325_p12 = pnand %p2559_p9, %p1945_p11  ;;  %p2102_p13 = scmp.ne.s32.totalorder %s2554_s1, %s2101_s13 }
  0x15   : > { %p2108_p3 = scmp.lt.u32.totalorder %s2101_s13, %s2554_s1 }
  0x16   : > { %p2103_p0 = pneg %p2325_p12 }
  0x18   : > { %p2104_p1 = pnand %p2103_p0, %p2102_p13 }
  0x1a   : > { %p2105_p2 = pneg %p2104_p1 }
  0x1c   : > { %p2110_p4 = pnand %p2108_p3, %p2105_p2 }
  0x1e   : > { %2113 = shalt.err (!%p2110_p4)
}
  0x1f   : > { %s2114_s23 = scalar_lea.vmem %s174_s7, 9216  ;;  %p2122_p9 = scmp.lt.s32.totalorder %s174_s7, %s174_s7 }
  0x20   : > { %p2115_p7 = scmp.ne.s32.totalorder %s174_s7, %s2114_s23  ;;  %p2123_p6 = scmp.lt.s32.totalorder %s2114_s23, %s2114_s23 }
  0x22   : > { %p2117_p8 = pnand %p2115_p7, %p2103_p0  ;;  %p2124_p5 = por %p2123_p6, %p2122_p9 }
  0x24   : > { %p2118_p11 = pneg %p2117_p8 }
  0x26   : > { %p2125_p10 = pnand %p2124_p5, %p2118_p11 }
  0x28   : > { %2128 = shalt.err (!%p2125_p10)
}
  0x29   : > { %s2231_s25 = smov 64   ;;  %s2232_s26 = smov 4  }
  0x2a   : > { %1948 = dma.hbm_to_vmem [thread:$0]  (!%p2325_p12), %s2554_s1, 9216, %s174_s7, [#allocation3], %s2231_s25, %s2231_s25, %s2232_s26  }
  0x2b   : > { %s2129_s13 = scalar_lea.hbm %s2556_s3, 3072 }
  0x2c   : > { %p2130_p13 = scmp.ne.s32.totalorder %s2556_s3, %s2129_s13  ;;  %p2136_p9 = scmp.lt.u32.totalorder %s2129_s13, %s2556_s3 }
  0x2e   : > { %p2132_p5 = pnand %p2130_p13, %p2103_p0 }
  0x30   : > { %p2133_p6 = pneg %p2132_p5 }
  0x32   : > { %p2138_p10 = pnand %p2136_p9, %p2133_p6 }
  0x34   : > { %2141 = shalt.err (!%p2138_p10)
}
  0x35   : > { %s2142_s7 = scalar_lea.vmem %s2329_s10, 3072  ;;  %p2150_p4 = scmp.lt.s32.totalorder %s2329_s10, %s2329_s10 }
  0x36   : > { %p2143_p1 = scmp.ne.s32.totalorder %s2329_s10, %s2142_s7  ;;  %p2151_p7 = scmp.lt.s32.totalorder %s2142_s7, %s2142_s7 }
  0x38   : > { %p2145_p2 = pnand %p2143_p1, %p2103_p0  ;;  %p2152_p8 = por %p2151_p7, %p2150_p4 }
  0x3a   : > { %p2146_p3 = pneg %p2145_p2 }
  0x3c   : > { %p2153_p11 = pnand %p2152_p8, %p2146_p3 }
  0x3e   : > { %2156 = shalt.err (!%p2153_p11)
}
  0x3f   : > { %1951 = dma.hbm_to_vmem [thread:$0]  (!%p2325_p12), %s2556_s3, 3072, %s2329_s10, [#allocation6], %s2231_s25, %s2231_s25, %s2232_s26  }
  0x40   : > { %p2566_p13 = scmp.ne.s32.totalorder %s2564_s30, 0 }
  0x41   : > { %p2567_p5 = scmp.eq.s32.totalorder (!%p2566_p13), %s2289_s22, 0 }
  0x42   : > { %216 = sbr.rel (%p2566_p13) target bundleno = 636 (0x27c), region = 40 }
  0x49   : > { %2202 = dma.done.wait (%p2567_p5), [#allocation3], 9216   ;;  %p2568_p0 = pmov %p2567_p5 }
  0x4b   : > { %2204 = vsyncadd (%p2568_p0), [#allocation3], 4294958080  ;;  %p2569_p6 = pmov %p2568_p0 }
  0x4c   : > { %p2570_p9 = pmov %p2568_p0 }
  0x4d   : > { %2206 = dma.done.wait (%p2569_p6), [#allocation6], 3072  }
  0x4e   : > { %2208 = vsyncadd (%p2570_p9), [#allocation6], 4294964224  ;;  %v2233_v0 = vmov 0.0   ;;  %vm2234_vm0 = vmmov 0   ;;  %v2001_v1 = vld [vmem:[#allocation2 + $0x40] sm:$0xff]   ;;  %v2004_v4 = vld [vmem:[#allocation2 + $0x48] sm:$0xff]  }
  0x4f   : > { %1855 = vmatprep.subr.bf16.mxu1 %v2233_v0  ;;  %1871 = vmatprep.mubr.msk.bf16.mxu1 %vm2234_vm0, %v2233_v0  ;;  %v2002_v2 = vld [vmem:[#allocation2] sm:$0xff]   ;;  %v2005_v5 = vld [vmem:[#allocation2 + $0x8] sm:$0xff]   ;;  %v2007_v7 = vld [vmem:[#allocation2 + $0x50] sm:$0xff]   ;;  %p248_p12 = scmp.lt.s32.totalorder %s2289_s22, 1  ;;  %vm282_vm1 = vcmask 1046528   ;;  %vm335_vm3 = vcmask 1045504  }
  0x50   : > { %1731 = vmatprep.subr.bf16.mxu0 %v2001_v1  ;;  %v2003_v3 = vld [vmem:[#allocation2 + $0x80] sm:$0xff]   ;;  %v2006_v6 = vld [vmem:[#allocation2 + $0x88] sm:$0xff]   ;;  %v2008_v8 = vld [vmem:[#allocation2 + $0x10] sm:$0xff]   ;;  %vm266_vm2 = vsmask.f32 7424  ;;  %s245_s16 = sand.u32 1, %s2219_s19  }
  0x51   : > { %1732 = vmatpush3.bf16.msra.mxu0 %v2002_v2  ;;  %1856 = vmatpush3.bf16.msra.mxu1 %v2003_v3  ;;  %v2009_v9 = vld [vmem:[#allocation2 + $0x90] sm:$0xff]   ;;  %v2010_v10 = vld [vmem:[#allocation2 + $0x58] sm:$0xff]   ;;  %v2013_v13 = vld [vmem:[#allocation2 + $0x60] sm:$0xff]   ;;  %s249_s30 = scalar_select %p248_p12, %s2289_s22, 1  ;;  %vm636_vm4 = vsmask.f32 6400 }
  0x52   : > { %1733 = vmatprep.subr.bf16.mxu0 %v2004_v4  ;;  %1857 = vmatprep.subr.bf16.mxu1 %v2233_v0  ;;  %v2011_v11 = vld [vmem:[#allocation2 + $0x18] sm:$0xff]   ;;  %v2014_v14 = vld [vmem:[#allocation2 + $0x20] sm:$0xff]   ;;  %v2016_v16 = vld [vmem:[#allocation2 + $0x68] sm:$0xff]   ;;  %vm919_vm5 = vsmask.f32 5376  ;;  %s1615_s17 = sshll.u32 %s245_s16, 4 }
  0x53   : > { %v2012_v12 = vld [vmem:[#allocation2 + $0x98] sm:$0xff]   ;;  %v2015_v15 = vld [vmem:[#allocation2 + $0xa0] sm:$0xff]   ;;  %v2017_v17 = vld [vmem:[#allocation2 + $0x28] sm:$0xff]   ;;  %s1729_s8 = sshll.u32 %s249_s30, 4  ;;  %s247_s6 = scalar_lea.vmem [#allocation7], %s1615_s17 }
  0x54   : > { %v2018_v18 = vld [vmem:[#allocation2 + $0xa8] sm:$0xff]   ;;  %v2019_v19 = vld [vmem:[#allocation2 + $0x70] sm:$0xff]   ;;  %s2401_s26 = scalar_lea.vmem %s2553_s0, %s1729_s8  ;;  %v2022_v22 = vld [vmem:[#allocation2 + $0x78] sm:$0xff]   ;;  %s1523_s30 = sshll.u32 %s247_s6, 4  ;;  %s2505_s30 = int_to_ptr.vmem [resolvable:$true] %s1523_s30 }
  0x55   : > { %1734 = vmatpush3.bf16.msra.mxu0 %v2005_v5  ;;  %1858 = vmatpush3.bf16.msra.mxu1 %v2006_v6  ;;  %v2020_v20 = vld [vmem:[#allocation2 + $0x30] sm:$0xff]   ;;  %v254_v23 = vld [vmem:[%s2401_s26] sm:$0xf]  ;;  %v2405_v24 = vld [vmem:[%s2401_s26 + $0x4] sm:$0xf]  ;;  %s1730_s8 = sshll.u32 %s2289_s22, 8 }
  0x56   : > { %1735 = vmatprep.subr.bf16.mxu0 %v2007_v7  ;;  %1859 = vmatprep.subr.bf16.mxu1 %v2233_v0  ;;  %v2021_v21 = vld [vmem:[#allocation2 + $0xb0] sm:$0xff]   ;;  %v2408_v25 = vld [vmem:[%s2401_s26 + $0x8] sm:$0xf]  ;;  %v2412_v26 = vcombine.low %v254_v23, %v2405_v24  ;;  %v2023_v29 = vld [vmem:[#allocation2 + $0x38] sm:$0xff]   ;;  %s2512_s9 = scalar_lea.sflag [#allocation4], %s245_s16  ;;  %s2157_s22 = scalar_lea.vmem %s2505_s30, 256 }
  0x57   : > { %v1619_v27 = vcombine.low %v2408_v25, %v2408_v25  ;;  %v1671_v28 = vcombine.low %v2405_v24, %v2408_v25  ;;  %v2024_v34 = vld [vmem:[#allocation2 + $0xb8] sm:$0xff]   ;;  %v2027_v35 = vld [vmem:[#allocation2 + $0x100] sm:$0xff]   ;;  %v2030_v54 = vld [vmem:[#allocation2 + $0x108] sm:$0xff]   ;;  %p2158_p10 = scmp.ne.s32.totalorder %s2505_s30, %s2157_s22  ;;  %p2571_p1 = scmp.ne.s32.totalorder %s2562_s28, 0 }
  0x58   : > { %v2419_v30 = vshrl.u32 %v2412_v26, 16  ;;  %v2422_v31 = vshll.u32 %v2412_v26, 16  ;;  %v283_v36 = vrot.slane %v2412_v26, 1  ;;  %v336_v44 = vrot.slane %v2412_v26, 2  ;;  %v2029_v47 = vld [vmem:[#allocation2 + $0x140] sm:$0xff]   ;;  %v2032_v57 = vld [vmem:[#allocation2 + $0x148] sm:$0xff]  }
  0x59   : > { %1736 = vmatpush3.bf16.msra.mxu0 %v2008_v8  ;;  %1860 = vmatpush3.bf16.msra.mxu1 %v2009_v9  ;;  %v2424_v32 = vshll.u32 %v1619_v27, 16  ;;  %v2426_v33 = vshrl.u32 %v1619_v27, 16  ;;  %v284_v37 = vrot.slane %v1619_v27, 1  ;;  %v2436_v45 = vrot.slane %v1619_v27, 2  ;;  %v2028_v52 = vld [vmem:[#allocation2 + $0xc0] sm:$0xff]   ;;  %v2031_v59 = vld [vmem:[#allocation2 + $0xc8] sm:$0xff]   ;;  %p2159_p2 = pnand %p2158_p10, %p2571_p1 }
  0x5a   : > { %1737 = vmatprep.subr.bf16.mxu0 %v2010_v10  ;;  %1861 = vmatprep.subr.bf16.mxu1 %v2233_v0  ;;  %v272_v38 = vrot.slane %v2422_v31, 1  ;;  %v2033_v62 = vld [vmem:[#allocation2 + $0x110] sm:$0xff]   ;;  %v2036_v7 = vld [vmem:[#allocation2 + $0x118] sm:$0xff]   ;;  %v2043_v23 = vld [vmem:[#allocation2 + $0xe8] sm:$0xff]   ;;  %s2235_s11 = smov [#allocation7]  }
  0x5b   : > { %v277_v39 = vrot.slane %v2424_v32, 1  ;;  %v285_v40 = vsel %vm282_vm1, %v283_v36, %v284_v37  ;;  %v343_v41 = vrot.slane %v284_v37, 2  ;;  %v338_v53 = vsel %vm335_vm3, %v336_v44, %v2436_v45  ;;  %v2035_v1 = vld [vmem:[#allocation2 + $0x150] sm:$0xff]   ;;  %v2038_v8 = vld [vmem:[#allocation2 + $0x158] sm:$0xff]   ;;  %v2064_v24 = vld [vmem:[#allocation2 + $0x1a0] sm:$0xff]   ;;  %p2160_p3 = pneg %p2159_p2  ;;  %s2161_s12 = sshll.u32 %s2235_s11, 4  ;;  %s2162_s12 = int_to_ptr.vmem [resolvable:$false] %s2161_s12 }
  0x5c   : > { %v273_v42 = vor.u32 %v272_v38, %v2419_v30  ;;  %v342_v46 = vrot.slane %v285_v40, 2  ;;  %v645_v55 = vshrl.u32 %v285_v40, 16  ;;  %v648_v58 = vshll.u32 %v285_v40, 16  ;;  %v2034_v4 = vld [vmem:[#allocation2 + $0xd0] sm:$0xff]   ;;  %v2037_v10 = vld [vmem:[#allocation2 + $0xd8] sm:$0xff]   ;;  %v2066_v25 = vld [vmem:[#allocation2 + $0x1e8] sm:$0xff]   ;;  %p2164_p4 = scmp.lt.s32.totalorder %s2505_s30, %s2162_s12 }
  0x5d   : > { %1738 = vmatpush3.bf16.msra.mxu0 %v2011_v11  ;;  %1862 = vmatpush3.bf16.msra.mxu1 %v2012_v12  ;;  %v281_v43 = vor.u32 %v2426_v33, %v277_v39  ;;  %v653_v63 = vshrl.u32 %v284_v37, 16  ;;  %v656_v2 = vshll.u32 %v284_v37, 16  ;;  %v662_v12 = vshrl.u32 %v338_v53, 16  ;;  %v2045_v27 = vld [vmem:[#allocation2 + $0x130] sm:$0xff]   ;;  %v2048_v40 = vld [vmem:[#allocation2 + $0x138] sm:$0xff]   ;;  %s2163_s13 = scalar_lea.vmem %s2162_s12, 512 }
  0x5e   : > { %1739 = vmatprep.subr.bf16.mxu0 %v2013_v13  ;;  %1863 = vmatprep.subr.bf16.mxu1 %v2233_v0  ;;  %v278_v48 = vsel %vm266_vm2, %v273_v42, %v277_v39  ;;  %v344_v51 = vsel %vm335_vm3, %v342_v46, %v343_v41  ;;  %v647_v60 = vrot.slane %v645_v55, 1  ;;  %v650_v61 = vrot.slane %v648_v58, 2  ;;  %v2039_v13 = vld [vmem:[#allocation2 + $0x120] sm:$0xff]   ;;  %v2046_v38 = vld [vmem:[#allocation2 + $0xf0] sm:$0xff]   ;;  %v2050_v41 = vld [vmem:[#allocation2 + $0x178] sm:$0xff]   ;;  %p2165_p7 = scmp.lt.s32.totalorder %s2163_s13, %s2157_s22 }
  0x5f   : > { %v340_v49 = vrot.slane %v281_v43, 2  ;;  %v339_v50 = vrot.slane %v278_v48, 2  ;;  %v655_v3 = vrot.slane %v653_v63, 1  ;;  %v658_v6 = vrot.slane %v656_v2, 2  ;;  %v2054_v55 = vld [vmem:[#allocation2 + $0x1c8] sm:$0xff]  }
  0x60   : > { %v651_v5 = vor.u32 %v650_v61, %v647_v60  ;;  %v640_v39 = vrot.slane %v2426_v33, 1  ;;  %v641_v42 = vrot.slane %v2424_v32, 2  ;;  %v920_v43 = vrot.slane %v2419_v30, 2  ;;  %v2055_v58 = vld [vmem:[#allocation2 + $0x188] sm:$0xff]   ;;  %v2059_v60 = vld [vmem:[#allocation2 + $0x210] sm:$0xff]   ;;  %p2166_p8 = por %p2165_p7, %p2164_p4 }
  0x61   : > { %1740 = vmatpush3.bf16.msra.mxu0 %v2014_v14  ;;  %1864 = vmatpush3.bf16.msra.mxu1 %v2015_v15  ;;  %v341_v56 = vsel %vm335_vm3, %v339_v50, %v340_v49  ;;  %v659_v9 = vor.u32 %v658_v6, %v655_v3  ;;  %v2041_v14 = vld [vmem:[#allocation2 + $0x160] sm:$0xff]   ;;  %v665_v15 = vshll.u32 %v338_v53, 16  ;;  %v921_v44 = vrot.slane %v2422_v31, 3  ;;  %v2049_v49 = vld [vmem:[#allocation2 + $0xf8] sm:$0xff]   ;;  %v2058_v61 = vld [vmem:[#allocation2 + $0x190] sm:$0xff]  }
  0x62   : > { %1741 = vmatprep.subr.bf16.mxu0 %v2016_v16  ;;  %1865 = vmatprep.subr.bf16.mxu1 %v2233_v0  ;;  %v2040_v16 = vld [vmem:[#allocation2 + $0xe0] sm:$0xff]   ;;  %v924_v48 = vrot.slane %v2424_v32, 3  ;;  %v932_v63 = vrot.slane %v1671_v28, 1  ;;  %v2076_v2 = vld [vmem:[%s2401_s26 + $0xc] ss:$0 sps:$4 sm:$0x11]   ;;  %s2510_s26 = scalar_lea.hbm %s2558_s5, %s1730_s8  ;;  %p2167_p11 = pnand %p2166_p8, %p2160_p3 }
  0x63   : > { %524 = vmatprep.mubr.bf16.mxu0 %v341_v56  ;;  %v660_v11 = vsel %vm636_vm4, %v651_v5, %v659_v9  ;;  %v2056_v56 = vld [vmem:[#allocation2 + $0x208] sm:$0xff]   ;;  %v2061_v3 = vld [vmem:[#allocation2 + $0x198] sm:$0xff]   ;;  %v2063_v5 = vld [vmem:[#allocation2 + $0x1e0] sm:$0xff]  }
  0x64   : > { %v2065_v6 = vld [vmem:[#allocation2 + $0x220] sm:$0xff]   ;;  %v2068_v28 = vld [vmem:[#allocation2 + $0x228] sm:$0xff]   ;;  %v2069_v9 = vld [vmem:[#allocation2 + $0x1f0] sm:$0xff]  }
  0x65   : > { %1742 = vmatpush3.bf16.msra.mxu0 %v2017_v17  ;;  %1866 = vmatpush3.bf16.msra.mxu1 %v2018_v18  ;;  %v2042_v17 = vld [vmem:[#allocation2 + $0x128] sm:$0xff]   ;;  %v664_v18 = vrot.slane %v662_v12, 1  ;;  %v2072_v12 = vld [vmem:[#allocation2 + $0x1f8] sm:$0xff]  }
  0x66   : > { %1743 = vmatprep.subr.bf16.mxu0 %v2019_v19  ;;  %1867 = vmatprep.subr.bf16.mxu1 %v2233_v0  ;;  %v2044_v19 = vld [vmem:[#allocation2 + $0x168] sm:$0xff]  }
  0x69   : > { %1744 = vmatpush3.bf16.msra.mxu0 %v2020_v20  ;;  %1868 = vmatpush3.bf16.msra.mxu1 %v2021_v21  ;;  %v670_v20 = vshrl.u32 %v2436_v45, 16  ;;  %v673_v21 = vshll.u32 %v2436_v45, 16 }
  0x6a   : > { %1745 = vmatprep.subr.bf16.mxu0 %v2022_v22  ;;  %1869 = vmatprep.subr.bf16.mxu1 %v2233_v0  ;;  %v667_v22 = vrot.slane %v665_v15, 2  ;;  %v2077_v15 = vld [vmem:[#allocation5 + $0x40] sm:$0xff]  }
  0x6b   : > { %v672_v36 = vrot.slane %v670_v20, 1  ;;  %v675_v37 = vrot.slane %v673_v21, 2  ;;  %v2082_v20 = vld [vmem:[#allocation5 + $0x10] sm:$0xff]   ;;  %v2083_v21 = vld [vmem:[#allocation5 + $0x58] sm:$0xff]  }
  0x6c   : > { %v668_v45 = vor.u32 %v667_v22, %v664_v18  ;;  %v2080_v18 = vld [vmem:[#allocation5 + $0x8] sm:$0xff]   ;;  %v2084_v22 = vld [vmem:[#allocation5 + $0x18] sm:$0xff]  }
  0x6d   : > { %1746 = vmatpush3.bf16.msra.mxu0 %v2023_v29  ;;  %1870 = vmatpush3.bf16.msra.mxu1 %v2024_v34  ;;  %v637_v29 = vrot.slane %v2419_v30, 1  ;;  %v2047_v34 = vld [vmem:[#allocation2 + $0x170] sm:$0xff]   ;;  %v676_v46 = vor.u32 %v675_v37, %v672_v36  ;;  %v2091_v36 = vld [vmem:[#allocation5 + $0x78] sm:$0xff]  }
  0x6e   : > { %1762 = vmatprep.subr.bf16.mxu0 %v2027_v35  ;;  %1875 = vmatprep.subr.bf16.mxu1 %v2233_v0  ;;  %v638_v35 = vrot.slane %v2422_v31, 2  ;;  %v2053_v31 = vld [vmem:[#allocation2 + $0x200] sm:$0xff]   ;;  %v2092_v37 = vld [vmem:[#allocation5 + $0x38] sm:$0xff]  }
  0x6f   : > { %v677_v30 = vsel %vm636_vm4, %v668_v45, %v676_v46  ;;  %v2100_v45 = vld [vmem:[#allocation5 + $0xb8] sm:$0xff]  }
  0x70   : > { %1872 = vmatmul.mubr.bf16.vlgmr.msra.gmra.mrb[0].mxu1 %v344_v51  ;;  %525 = vmatmul.mubr.bf16.vlgmr.msra.gmra.mrb[0].mxu0 %v338_v53  ;;  %v639_v50 = vor.u32 %v638_v35, %v637_v29  ;;  %v642_v51 = vor.u32 %v641_v42, %v640_v39  ;;  %v922_v53 = vor.u32 %v921_v44, %v920_v43  ;;  %v2088_v29 = vld [vmem:[#allocation5 + $0x28] sm:$0xff]   ;;  %v2090_v35 = vld [vmem:[#allocation5 + $0x30] sm:$0xff]   ;;  %v2097_v42 = vld [vmem:[#allocation5 + $0xa0] sm:$0xff]  }
  0x71   : > { %1876 = vmatpush3.bf16.msra.mxu1 %v2029_v47  ;;  %1891 = vmatprep.mubr.msk.bf16.mxu1 %vm2234_vm0, %v2233_v0  ;;  %v923_v47 = vrot.slane %v2426_v33, 2  ;;  %v2052_v33 = vld [vmem:[#allocation2 + $0x180] sm:$0xff]   ;;  %v2094_v39 = vld [vmem:[#allocation5 + $0x88] sm:$0xff]   ;;  %v2099_v44 = vld [vmem:[#allocation5 + $0xb0] sm:$0xff]  }
  0x72   : > { %1877 = vmatprep.subr.bf16.mxu1 %v2233_v0  ;;  %1763 = vmatpush3.bf16.msra.mxu0 %v2028_v52  ;;  %v2051_v52 = vld [vmem:[#allocation2 + $0x1c0] sm:$0xff]   ;;  %v643_v32 = vsel %vm636_vm4, %v639_v50, %v642_v51  ;;  %v2098_v43 = vld [vmem:[#allocation5 + $0xa8] sm:$0xff]  }
  0x73   : > { %1764 = vmatprep.subr.bf16.mxu0 %v2030_v54  ;;  %857 = vmatprep.mubr.bf16.mxu0 %v660_v11  ;;  %v925_v54 = vor.u32 %v924_v48, %v923_v47  ;;  %v2070_v11 = vld [vmem:[#allocation2 + $0x1b0] sm:$0xff]  }
  0x75   : > { %1878 = vmatpush3.bf16.msra.mxu1 %v2032_v57  ;;  %v926_v57 = vsel %vm919_vm5, %v922_v53, %v925_v54 }
  0x76   : > { %1879 = vmatprep.subr.bf16.mxu1 %v2233_v0  ;;  %1765 = vmatpush3.bf16.msra.mxu0 %v2031_v59  ;;  %v2057_v59 = vld [vmem:[#allocation2 + $0x1d0] sm:$0xff]  }
  0x77   : > { %1766 = vmatprep.subr.bf16.mxu0 %v2033_v62  ;;  %v2060_v62 = vld [vmem:[#allocation2 + $0x1d8] sm:$0xff]  }
  0x79   : > { %1880 = vmatpush3.bf16.msra.mxu1 %v2035_v1  ;;  %v2062_v1 = vld [vmem:[#allocation2 + $0x218] sm:$0xff]  }
  0x7a   : > { %1881 = vmatprep.subr.bf16.mxu1 %v2233_v0  ;;  %1767 = vmatpush3.bf16.msra.mxu0 %v2034_v4  ;;  %v933_v4 = vrot.slane %v2076_v2, 1 }
  0x7b   : > { %1768 = vmatprep.subr.bf16.mxu0 %v2036_v7 }
  0x7c   : > { %v934_v7 = vsel %vm282_vm1, %v932_v63, %v933_v4  ;;  %v1670_v4 = vld [vmem:[%s2555_s2 + $0x1] ss:$0 sm:$0xff] }
  0x7d   : > { %1882 = vmatpush3.bf16.msra.mxu1 %v2038_v8  ;;  %v2067_v8 = vld [vmem:[#allocation2 + $0x1a8] sm:$0xff]  }
  0x7e   : > { %1883 = vmatprep.subr.bf16.mxu1 %v2233_v0  ;;  %1769 = vmatpush3.bf16.msra.mxu0 %v2037_v10  ;;  %v2071_v10 = vld [vmem:[#allocation2 + $0x230] sm:$0xff]  }
  0x7f   : > { %1770 = vmatprep.subr.bf16.mxu0 %v2039_v13  ;;  %v2074_v13 = vld [vmem:[#allocation2 + $0x238] sm:$0xff]  }
  0x81   : > { %1884 = vmatpush3.bf16.msra.mxu1 %v2041_v14  ;;  %v2073_v14 = vld [vmem:[#allocation2 + $0x1b8] sm:$0xff]  }
  0x82   : > { %1885 = vmatprep.subr.bf16.mxu1 %v2233_v0  ;;  %1771 = vmatpush3.bf16.msra.mxu0 %v2040_v16  ;;  %v2078_v16 = vld [vmem:[#allocation5] sm:$0xff]  }
  0x83   : > { %1772 = vmatprep.subr.bf16.mxu0 %v2042_v17  ;;  %v2079_v17 = vld [vmem:[#allocation5 + $0x48] sm:$0xff]  }
  0x85   : > { %1886 = vmatpush3.bf16.msra.mxu1 %v2044_v19  ;;  %v2081_v19 = vld [vmem:[#allocation5 + $0x50] sm:$0xff]  }
  0x86   : > { %1887 = vmatprep.subr.bf16.mxu1 %v2233_v0  ;;  %1773 = vmatpush3.bf16.msra.mxu0 %v2043_v23  ;;  %v2085_v23 = vld [vmem:[#allocation5 + $0x60] sm:$0xff]  }
  0x87   : > { %1774 = vmatprep.subr.bf16.mxu0 %v2045_v27  ;;  %v2086_v27 = vld [vmem:[#allocation5 + $0x20] sm:$0xff]  }
  0x89   : > { %1888 = vmatpush3.bf16.msra.mxu1 %v2047_v34  ;;  %v2089_v34 = vld [vmem:[#allocation5 + $0x70] sm:$0xff]  }
  0x8a   : > { %1889 = vmatprep.subr.bf16.mxu1 %v2233_v0  ;;  %1775 = vmatpush3.bf16.msra.mxu0 %v2046_v38  ;;  %v2093_v38 = vld [vmem:[#allocation5 + $0x80] sm:$0xff]  }
  0x8b   : > { %1776 = vmatprep.subr.bf16.mxu0 %v2048_v40  ;;  %v2095_v40 = vld [vmem:[#allocation5 + $0x90] sm:$0xff]  }
  0x8d   : > { %1890 = vmatpush3.bf16.msra.mxu1 %v2050_v41  ;;  %v2096_v41 = vld [vmem:[#allocation5 + $0x98] sm:$0xff]  }
  0x8e   : > { %1895 = vmatprep.subr.bf16.mxu1 %v2233_v0  ;;  %1777 = vmatpush3.bf16.msra.mxu0 %v2049_v49 }
  0x8f   : > { %1793 = vmatprep.subr.bf16.mxu0 %v2051_v52 }
  0x90   : > { %1892 = vmatmul.mubr.bf16.vlgmr.msra.gmra.mrb[4].mxu1 %v677_v30 }
  0x91   : > { %1896 = vmatpush3.bf16.msra.mxu1 %v2053_v31  ;;  %1911 = vmatprep.mubr.msk.bf16.mxu1 %vm2234_vm0, %v2233_v0  ;;  %v1644_v31 = vld [vmem:[%s2555_s2] ss:$0 sm:$0xff] }
  0x92   : > { %1897 = vmatprep.subr.bf16.mxu1 %v2233_v0  ;;  %858 = vmatmul.mubr.bf16.vlgmr.msra.gmra.mrb[4].mxu0 %v643_v32 }
  0x93   : > { %1794 = vmatpush3.bf16.msra.mxu0 %v2052_v33  ;;  %1163 = vmatprep.mubr.bf16.mxu0 %v926_v57 }
  0x94   : > { %1795 = vmatprep.subr.bf16.mxu0 %v2054_v55 }
  0x95   : > { %1898 = vmatpush3.bf16.msra.mxu1 %v2056_v56 }
  0x96   : > { %1899 = vmatprep.subr.bf16.mxu1 %v2233_v0 }
  0x97   : > { %1796 = vmatpush3.bf16.msra.mxu0 %v2055_v58 }
  0x98   : > { %1797 = vmatprep.subr.bf16.mxu0 %v2057_v59 }
  0x99   : > { %1900 = vmatpush3.bf16.msra.mxu1 %v2059_v60 }
  0x9a   : > { %1901 = vmatprep.subr.bf16.mxu1 %v2233_v0 }
  0x9b   : > { %1798 = vmatpush3.bf16.msra.mxu0 %v2058_v61 }
  0x9c   : > { %1799 = vmatprep.subr.bf16.mxu0 %v2060_v62 }
  0x9d   : > { %1902 = vmatpush3.bf16.msra.mxu1 %v2062_v1 }
  0x9e   : > { %1903 = vmatprep.subr.bf16.mxu1 %v2233_v0 }
  0x9f   : > { %1800 = vmatpush3.bf16.msra.mxu0 %v2061_v3 }
  0xa0   : > { %1801 = vmatprep.subr.bf16.mxu0 %v2063_v5 }
  0xa1   : > { %1904 = vmatpush3.bf16.msra.mxu1 %v2065_v6 }
  0xa2   : > { %1905 = vmatprep.subr.bf16.mxu1 %v2233_v0 }
  0xa3   : > { %1802 = vmatpush3.bf16.msra.mxu0 %v2064_v24 }
  0xa4   : > { %1803 = vmatprep.subr.bf16.mxu0 %v2066_v25 }
  0xa5   : > { %1906 = vmatpush3.bf16.msra.mxu1 %v2068_v28 }
  0xa6   : > { %1907 = vmatprep.subr.bf16.mxu1 %v2233_v0 }
  0xa7   : > { %1804 = vmatpush3.bf16.msra.mxu0 %v2067_v8 }
  0xa8   : > { %1805 = vmatprep.subr.bf16.mxu0 %v2069_v9 }
  0xa9   : > { %1908 = vmatpush3.bf16.msra.mxu1 %v2071_v10 }
  0xaa   : > { %1909 = vmatprep.subr.bf16.mxu1 %v2233_v0 }
  0xab   : > { %1806 = vmatpush3.bf16.msra.mxu0 %v2070_v11 }
  0xac   : > { %1807 = vmatprep.subr.bf16.mxu0 %v2072_v12 }
  0xad   : > { %1910 = vmatpush3.bf16.msra.mxu1 %v2074_v13 }
  0xae   : > { %1915 = vmatprep.subr.bf16.mxu1 %v2233_v0 }
  0xaf   : > { %1808 = vmatpush3.bf16.msra.mxu0 %v2073_v14 }
  0xb0   : > { %1912 = vmatmul.mubr.bf16.vlgmr.msra.gmra.mrb[8].mxu1 %v934_v7  ;;  %1824 = vmatprep.subr.bf16.mxu0 %v2077_v15 }
  0xb1   : > { %1931 = vmatprep.mubr.msk.bf16.mxu1 %vm2234_vm0, %v2233_v0  ;;  %1916 = vmatpush3.bf16.msra.mxu1 %v2093_v38 }
  0xb2   : > { %1164 = vmatmul.mubr.bf16.vlgmr.msra.gmra.mrb[8].mxu0 %v2412_v26  ;;  %v2087_v26 = vld [vmem:[#allocation5 + $0x68] sm:$0xff]   ;;  %1917 = vmatprep.subr.bf16.mxu1 %v2233_v0 }
  0xb3   : > { %1825 = vmatpush3.bf16.msra.mxu0 %v2078_v16 }
  0xb4   : > { %1826 = vmatprep.subr.bf16.mxu0 %v2079_v17 }
  0xb5   : > { %1918 = vmatpush3.bf16.msra.mxu1 %v2094_v39 }
  0xb6   : > { %1919 = vmatprep.subr.bf16.mxu1 %v2233_v0 }
  0xb7   : > { %1827 = vmatpush3.bf16.msra.mxu0 %v2080_v18 }
  0xb8   : > { %1828 = vmatprep.subr.bf16.mxu0 %v2081_v19  ;;  %v1698_v19 = vld [vmem:[%s2555_s2 + $0x2] ss:$0 sm:$0xff] }
  0xb9   : > { %1920 = vmatpush3.bf16.msra.mxu1 %v2095_v40 }
  0xba   : > { %1921 = vmatprep.subr.bf16.mxu1 %v2233_v0 }
  0xbb   : > { %1829 = vmatpush3.bf16.msra.mxu0 %v2082_v20 }
  0xbc   : > { %1830 = vmatprep.subr.bf16.mxu0 %v2083_v21 }
  0xbd   : > { %1922 = vmatpush3.bf16.msra.mxu1 %v2096_v41 }
  0xbe   : > { %1923 = vmatprep.subr.bf16.mxu1 %v2233_v0 }
  0xbf   : > { %1831 = vmatpush3.bf16.msra.mxu0 %v2084_v22 }
  0xc0   : > { %1832 = vmatprep.subr.bf16.mxu0 %v2085_v23 }
  0xc1   : > { %1924 = vmatpush3.bf16.msra.mxu1 %v2097_v42  ;;  %v1723_v42 = vld [vmem:[%s2557_s4] ss:$0 sm:$0xff] }
  0xc2   : > { %1925 = vmatprep.subr.bf16.mxu1 %v2233_v0 }
  0xc3   : > { %1833 = vmatpush3.bf16.msra.mxu0 %v2086_v27 }
  0xc4   : > { %1834 = vmatprep.subr.bf16.mxu0 %v2087_v26 }
  0xc5   : > { %1926 = vmatpush3.bf16.msra.mxu1 %v2098_v43 }
  0xc6   : > { %1927 = vmatprep.subr.bf16.mxu1 %v2233_v0 }
  0xc7   : > { %1835 = vmatpush3.bf16.msra.mxu0 %v2088_v29 }
  0xc8   : > { %1836 = vmatprep.subr.bf16.mxu0 %v2089_v34 }
  0xc9   : > { %1928 = vmatpush3.bf16.msra.mxu1 %v2099_v44 }
  0xca   : > { %1929 = vmatprep.subr.bf16.mxu1 %v2233_v0 }
  0xcb   : > { %1837 = vmatpush3.bf16.msra.mxu0 %v2090_v35 }
  0xcc   : > { %1838 = vmatprep.subr.bf16.mxu0 %v2091_v36 }
  0xcd   : > { %1930 = vmatpush3.bf16.msra.mxu1 %v2100_v45 }
  0xcf   : > { %1839 = vmatpush3.bf16.msra.mxu0 %v2092_v37 }
 0x143   : > { %v567_v46 = vpop.f32.mrb[0].mxu1  ;;  %v1747_v49 = vpop.f32.mrb[0].mxu0 }
 0x144   : > { %v1873_v47 = vpop.f32.mrb[1].mxu1  ;;  %v1748_v51 = vpop.f32.mrb[1].mxu0 }
 0x145   : > { %v570_v48 = vpop.f32.mrb[2].mxu1  ;;  %v1749_v52 = vadd.f32 %v1748_v51, %v1747_v49  ;;  %v1750_v30 = vpop.f32.mrb[2].mxu0 }
 0x146   : > { %v1874_v50 = vpop.f32.mrb[3].mxu1  ;;  %v1751_v53 = vpop.f32.mrb[3].mxu0 }
 0x147   : > { %v568_v54 = vadd.f32 %v1749_v52, %v567_v46  ;;  %v1752_v33 = vadd.f32 %v1751_v53, %v1750_v30 }
 0x149   : > { %v580_v32 = vadd.f32 %v1644_v31, %v568_v54  ;;  %v571_v55 = vadd.f32 %v1752_v33, %v570_v48 }
 0x14b   : > { %v581_v0 = vadd.f32 %v1644_v31, %v571_v55  ;;  %v582_v56 = vmax.f32 %v580_v32, 0.0 }
 0x14d   : > { %v583_v57 = vmax.f32 %v581_v0, 0.0 }
 0x14f   : > { %v584_v58 = vpack.c.bf16 %v583_v57, %v582_v56 }
 0x163   : > { %v900_v59 = vpop.f32.mrb[4].mxu1 }
 0x164   : > { %v1893_v60 = vpop.f32.mrb[5].mxu1 }
 0x165   : > { %v903_v61 = vpop.f32.mrb[6].mxu1  ;;  %v1778_v62 = vpop.f32.mrb[4].mxu0 }
 0x166   : > { %v1894_v63 = vpop.f32.mrb[7].mxu1  ;;  %v1779_v1 = vpop.f32.mrb[5].mxu0 }
 0x167   : > { %v1780_v2 = vadd.f32 %v1779_v1, %v1778_v62  ;;  %v1781_v3 = vpop.f32.mrb[6].mxu0 }
 0x168   : > { %v1782_v5 = vpop.f32.mrb[7].mxu0 }
 0x169   : > { %v901_v6 = vadd.f32 %v1780_v2, %v900_v59  ;;  %v1783_v7 = vadd.f32 %v1782_v5, %v1781_v3 }
 0x16b   : > { %v913_v24 = vadd.f32 %v1670_v4, %v901_v6  ;;  %v904_v25 = vadd.f32 %v1783_v7, %v903_v61 }
 0x16d   : > { %v914_v28 = vadd.f32 %v1670_v4, %v904_v25  ;;  %v915_v8 = vmax.f32 %v913_v24, 0.0 }
 0x16f   : > { %v916_v9 = vmax.f32 %v914_v28, 0.0 }
 0x171   : > { %v917_v10 = vpack.c.bf16 %v916_v9, %v915_v8 }
 0x173   : > { %1449 = vmatprep.mubr.bf16.mxu0 %v917_v10 }
 0x174   : > { %1450 = vmatmul.mubr.bf16.vlgmr.msra.gmra.mrb[12].mxu0 %v584_v58 }
 0x183   : > { %v1206_v11 = vpop.f32.mrb[8].mxu1 }
 0x184   : > { %v1913_v12 = vpop.f32.mrb[9].mxu1 }
 0x185   : > { %v1209_v13 = vpop.f32.mrb[10].mxu1  ;;  %v1809_v14 = vpop.f32.mrb[8].mxu0 }
 0x186   : > { %v1914_v15 = vpop.f32.mrb[11].mxu1  ;;  %v1810_v16 = vpop.f32.mrb[9].mxu0 }
 0x187   : > { %v1811_v17 = vadd.f32 %v1810_v16, %v1809_v14  ;;  %v1812_v18 = vpop.f32.mrb[10].mxu0 }
 0x188   : > { %v1813_v20 = vpop.f32.mrb[11].mxu0 }
 0x189   : > { %v1207_v21 = vadd.f32 %v1811_v17, %v1206_v11  ;;  %v1814_v22 = vadd.f32 %v1813_v20, %v1812_v18 }
 0x18b   : > { %v1219_v23 = vadd.f32 %v1698_v19, %v1207_v21  ;;  %v1210_v27 = vadd.f32 %v1814_v22, %v1209_v13 }
 0x18d   : > { %v1220_v26 = vadd.f32 %v1698_v19, %v1210_v27  ;;  %v1221_v29 = vmax.f32 %v1219_v23, 0.0 }
 0x18f   : > { %v1222_v34 = vmax.f32 %v1220_v26, 0.0 }
 0x191   : > { %v1223_v35 = vpack.c.bf16 %v1222_v34, %v1221_v29 }
 0x193   : > { %1932 = vmatmul.mubr.bf16.vlgmr.msra.gmra.mrb[12].mxu1 %v1223_v35 }
 0x247   : > { %v1840_v36 = vpop.f32.mrb[12].mxu0 }
 0x248   : > { %v1841_v37 = vpop.f32.mrb[13].mxu0 }
 0x249   : > { %v1842_v38 = vadd.f32 %v1841_v37, %v1840_v36  ;;  %v1843_v39 = vpop.f32.mrb[14].mxu0 }
 0x24a   : > { %v1844_v40 = vpop.f32.mrb[15].mxu0 }
 0x24b   : > { %v1845_v41 = vadd.f32 %v1844_v40, %v1843_v39 }
 0x266   : > { %v1492_v43 = vpop.f32.mrb[12].mxu1 }
 0x267   : > { %v1493_v44 = vadd.f32 %v1842_v38, %v1492_v43  ;;  %v1933_v45 = vpop.f32.mrb[13].mxu1 }
 0x268   : > { %v1495_v46 = vpop.f32.mrb[14].mxu1 }
 0x269   : > { %v1505_v47 = vadd.f32 %v1723_v42, %v1493_v44  ;;  %v1496_v48 = vadd.f32 %v1845_v41, %v1495_v46  ;;  %v1934_v49 = vpop.f32.mrb[15].mxu1 }
 0x26b   : > { %1507 = vst [vmem:[%s247_s6] sm:$0xff] %v1505_v47  ;;  %v1506_v50 = vadd.f32 %v1723_v42, %v1496_v48 }
 0x26d   : > { %1508 = vst [vmem:[%s247_s6 + $0x8] sm:$0xff] %v1506_v50 }
 0x26e   : > { %2170 = shalt.err (!%p2167_p11)
}
 0x26f   : > { %s2171_s14 = scalar_lea.hbm %s2510_s26, 256  ;;  %s2175_s17 = scalar_lea.hbm %s2558_s5, 512 }
 0x270   : > { %p2172_p13 = scmp.ne.s32.totalorder %s2510_s26, %s2171_s14  ;;  %p2176_p6 = scmp.lt.u32.totalorder %s2510_s26, %s2558_s5 }
 0x271   : > { %p2177_p9 = scmp.lt.u32.totalorder %s2175_s17, %s2171_s14  ;;  %p2179_p10 = scmp.lt.u32.totalorder %s2171_s14, %s2510_s26 }
 0x272   : > { %p2173_p5 = pnand %p2172_p13, %p2571_p1 }
 0x273   : > { %p2178_p12 = por %p2177_p9, %p2176_p6 }
 0x274   : > { %p2174_p0 = pneg %p2173_p5 }
 0x275   : > { %p2180_p2 = por %p2179_p10, %p2178_p12 }
 0x277   : > { %p2181_p3 = pnand %p2180_p2, %p2174_p0 }
 0x279   : > { %2184 = shalt.err (!%p2181_p3)
}
 0x27a   : > { %s2236_s6 = smov 128   ;;  %s2237_s8 = smov 8  }
 0x27b   : > { %1943 = dma.vmem_to_hbm [thread:$0]  (%p2571_p1), %s2505_s30, 256, %s2510_s26, %s2512_s9, %s2236_s6, %s2236_s6, %s2237_s8  }
 0x27c PF: > { %p1960_p4 = scmp.ge.s32.totalorder %s2227_s21, 2  ;;  %s1538_s10 = sand.u32 1, %s2215_s18  }
 0x27d   : > { %p2572_p7 = scmp.ne.s32.totalorder %s2563_s29, 0  ;;  %s1539_s25 = scalar_lea.sflag [#allocation4], %s1538_s10 }
 0x27f   : > { %p1953_p8 = pnand %p1960_p4, %p2572_p7 }
 0x281   : > { %2210 = dma.done.wait (!%p1953_p8), %s1539_s25, 256  }
 0x282   : > { %2212 = vsyncadd (!%p1953_p8), %s1539_s25, 4294967040  ;;  %p17_p11 = scmp.ge.s32.totalorder %s2293_s24, 4   ;;  %s2573_s18 = smov %s2219_s19 }
 0x283   : > { %s2574_s19 = smov %s2223_s20  ;;  %s2575_s20 = smov %s2304_s27 }
 0x284   : > { %s2576_s21 = smov %s2293_s24  ;;  %19 = sbr.rel (!%p17_p11) target bundleno = 5 (0x5), region = 88 }
 0x28b   :  { %1544 = vsyncpa [#allocation3], 1 }
 0x28c   :  { %1546 = vsyncpa [#allocation3 + $0x1], 1 }
 0x28d   :  { %1547 = vsyncpa [#allocation6], 1 }
 0x28e   :  { %1548 = vsyncpa [#allocation4], 1 }
 0x28f   :  { %1550 = vsyncpa [#allocation4 + $0x1], 1 }

</bundles_post_ra>
